<compile_context>
chip_gen: v5e
topology: v5e:2x2
jax: 0.10.0
libtpu: 0.0.40
codegen_flags: <defaults>
</compile_context>

<pallas_src>
import jax
import jax.numpy as jnp
from jax.experimental import pallas as pl
from jax.experimental.pallas import tpu as pltpu

d_model = 64
d_ff = 512
LN_EPS = 1e-5


def _round_up(x, m):
    return ((x + m - 1) // m) * m


def _ffn_ln_kernel(x_ref, w1_ref, w2_ref, o_ref):
    # x_ref: (TM, d_model) f32 tile of tokens; w1_ref/w2_ref: resident bf16 weights.
    x = x_ref[...]  # f32, kept for residual + LayerNorm

    # fc: Linear(d_model, d_ff, bias=False) -> ReLU -> Linear(d_ff, d_model, bias=False)
    # bf16 operands into the MXU, f32 accumulation.
    h = jnp.dot(x.astype(jnp.bfloat16), w1_ref[...],
                preferred_element_type=jnp.float32)
    h = jnp.maximum(h, 0.0)
    y = jnp.dot(h.astype(jnp.bfloat16), w2_ref[...],
                preferred_element_type=jnp.float32)

    # residual add (f32)
    y = y + x

    # LayerNorm(d_model): gamma=1, beta=0, biased variance, eps inside rsqrt (all f32)
    mean = jnp.mean(y, axis=-1, keepdims=True)
    centered = y - mean
    var = jnp.mean(centered * centered, axis=-1, keepdims=True)
    o_ref[...] = (centered * jax.lax.rsqrt(var + LN_EPS)).astype(o_ref.dtype)


def poswise_ffn(x, w1, w2, *, tm=1024):
    """x: (B, S, d_model) f32; w1: (d_model, d_ff); w2: (d_ff, d_model) (torch weight.T)."""
    B, S, D = x.shape
    assert D == d_model
    M = B * S

    # Effective row tile: multiple of 8 sublanes, no larger than (padded) M.
    tm_eff = min(tm, _round_up(M, 8))
    M_pad = _round_up(M, tm_eff)

    x2 = x.reshape(M, D)
    if M_pad != M:
        x2 = jnp.pad(x2, ((0, M_pad - M), (0, 0)))  # zero rows -> LN-safe, sliced off below

    # bf16 weights for the MXU (also halves weight DMA bytes).
    w1b = w1.astype(jnp.bfloat16)
    w2b = w2.astype(jnp.bfloat16)

    grid = (M_pad // tm_eff,)

    cost = pl.CostEstimate(
        flops=2 * M_pad * d_model * d_ff * 2,          # two matmuls
        transcendentals=M_pad,                          # one rsqrt per row
        bytes_accessed=(2 * M_pad * D * 4               # x in + out (f32)
                        + 2 * d_model * d_ff * 2),      # both weight matrices (bf16)
    )

    out = pl.pallas_call(
        _ffn_ln_kernel,
        out_shape=jax.ShapeDtypeStruct((M_pad, D), x.dtype),
        grid_spec=pltpu.PrefetchScalarGridSpec(
            num_scalar_prefetch=0,
            grid=grid,
            in_specs=[
                pl.BlockSpec((tm_eff, D), lambda i: (i, 0)),       # activation tile
                pl.BlockSpec((d_model, d_ff), lambda i: (0, 0)),   # W1 resident
                pl.BlockSpec((d_ff, d_model), lambda i: (0, 0)),   # W2 resident
            ],
            out_specs=pl.BlockSpec((tm_eff, D), lambda i: (i, 0)),
        ),
        compiler_params=pltpu.CompilerParams(
            dimension_semantics=("parallel",),          # shards row tiles across v7x's 2 TCs
        ),
        cost_estimate=cost,
    )(x2, w1b, w2b)

    if M_pad != M:
        out = out[:M]
    return out.reshape(B, S, D)


def reference(x, w1, w2):
    h = jnp.maximum(x @ w1, 0.0)
    y = h @ w2 + x
    mean = jnp.mean(y, axis=-1, keepdims=True)
    var = jnp.mean((y - mean) ** 2, axis=-1, keepdims=True)
    return (y - mean) / jnp.sqrt(var + LN_EPS)


if __name__ == "__main__":
    key = jax.random.PRNGKey(0)
    kx, k1, k2 = jax.random.split(key, 3)

    B, S = 2, 8
    x = jax.random.normal(kx, (B, S, d_model), dtype=jnp.float32)

    # Deterministic synthetic parameters, stored as (in, out), i.e. torch weight.T
    w1 = jax.random.normal(k1, (d_model, d_ff), dtype=jnp.float32) * (1.0 / d_model ** 0.5)
    w2 = jax.random.normal(k2, (d_ff, d_model), dtype=jnp.float32) * (1.0 / d_ff ** 0.5)

    out = jax.block_until_ready(poswise_ffn(x, w1, w2))
    ref = reference(x, w1, w2)
    assert out.shape == (B, S, d_model)
    # bf16 MXU operands (f32 accumulate + f32 LN) -> slightly looser tolerance than pure f32.
    assert jnp.allclose(out, ref, atol=5e-2, rtol=5e-2), float(jnp.max(jnp.abs(out - ref)))
    print("KERNEL_OK")
</pallas_src>

<mosaic_0001>
module attributes {stable_mosaic.version = 11 : i64} {
  func.func @_ffn_ln_kernel(%arg0: i32, %arg1: memref<16x64xf32, #tpu.memory_space<vmem>>, %arg2: memref<64x512xbf16, #tpu.memory_space<vmem>>, %arg3: memref<512x64xbf16, #tpu.memory_space<vmem>>, %arg4: memref<16x64xf32, #tpu.memory_space<vmem>>) attributes {dimension_semantics = [#tpu.dimension_semantics<parallel>], iteration_bounds = array<i64: 1>, scalar_prefetch = 0 : i64, scratch_operands = 0 : i64, tpu.core_type = #tpu.core_type<tc>, window_params = [{transform_indices = @transform_0, window_bounds = array<i64: 16, 64>}, {pipeline_mode = #tpu.pipeline_mode<synchronous>, transform_indices = @transform_1, window_bounds = array<i64: 64, 512>}, {pipeline_mode = #tpu.pipeline_mode<synchronous>, transform_indices = @transform_2, window_bounds = array<i64: 512, 64>}, {transform_indices = @transform_3, window_bounds = array<i64: 16, 64>}]} {
    %c0 = arith.constant 0 : index
    %c0_0 = arith.constant 0 : index
    %0 = vector.load %arg1[%c0, %c0_0] : memref<16x64xf32, #tpu.memory_space<vmem>>, vector<16x64xf32>
    %1 = arith.truncf %0 : vector<16x64xf32> to vector<16x64xbf16>
    %c0_1 = arith.constant 0 : index
    %c0_2 = arith.constant 0 : index
    %2 = vector.load %arg2[%c0_1, %c0_2] : memref<64x512xbf16, #tpu.memory_space<vmem>>, vector<64x512xbf16>
    %cst = arith.constant dense<0.000000e+00> : vector<16x512xf32>
    %3 = tpu.matmul %1, %2, %cst {dimension_numbers = #tpu.dot_dimension_numbers<[1], [0], [0], [1], [0, 0, 1, 1], [], []>} : vector<16x64xbf16>, vector<64x512xbf16>, vector<16x512xf32> -> vector<16x512xf32>
    %cst_3 = arith.constant 0.000000e+00 : f32
    %4 = vector.broadcast %cst_3 : f32 to vector<16x512xf32>
    %5 = arith.maximumf %3, %4 : vector<16x512xf32>
    %6 = arith.truncf %5 : vector<16x512xf32> to vector<16x512xbf16>
    %c0_4 = arith.constant 0 : index
    %c0_5 = arith.constant 0 : index
    %7 = vector.load %arg3[%c0_4, %c0_5] : memref<512x64xbf16, #tpu.memory_space<vmem>>, vector<512x64xbf16>
    %cst_6 = arith.constant dense<0.000000e+00> : vector<16x64xf32>
    %8 = tpu.matmul %6, %7, %cst_6 {dimension_numbers = #tpu.dot_dimension_numbers<[1], [0], [0], [1], [0, 0, 1, 1], [], []>} : vector<16x512xbf16>, vector<512x64xbf16>, vector<16x64xf32> -> vector<16x64xf32>
    %9 = arith.addf %8, %0 : vector<16x64xf32>
    %cst_7 = arith.constant dense<0.000000e+00> : vector<16xf32>
    %10 = vector.multi_reduction <add>, %9, %cst_7 [1] : vector<16x64xf32> to vector<16xf32>
    %11 = vector.shape_cast %10 : vector<16xf32> to vector<16x1xf32>
    %cst_8 = arith.constant 6.400000e+01 : f32
    %12 = vector.broadcast %cst_8 : f32 to vector<16x1xf32>
    %13 = arith.divf %11, %12 : vector<16x1xf32>
    %14 = vector.broadcast %13 : vector<16x1xf32> to vector<16x64xf32>
    %15 = arith.subf %9, %14 : vector<16x64xf32>
    %16 = arith.mulf %15, %15 : vector<16x64xf32>
    %cst_9 = arith.constant dense<0.000000e+00> : vector<16xf32>
    %17 = vector.multi_reduction <add>, %16, %cst_9 [1] : vector<16x64xf32> to vector<16xf32>
    %18 = vector.shape_cast %17 : vector<16xf32> to vector<16x1xf32>
    %cst_10 = arith.constant 6.400000e+01 : f32
    %19 = vector.broadcast %cst_10 : f32 to vector<16x1xf32>
    %20 = arith.divf %18, %19 : vector<16x1xf32>
    %cst_11 = arith.constant 9.99999974E-6 : f32
    %21 = vector.broadcast %cst_11 : f32 to vector<16x1xf32>
    %22 = arith.addf %20, %21 : vector<16x1xf32>
    %23 = math.rsqrt %22 : vector<16x1xf32>
    %24 = vector.broadcast %23 : vector<16x1xf32> to vector<16x64xf32>
    %25 = arith.mulf %15, %24 : vector<16x64xf32>
    %c0_12 = arith.constant 0 : index
    %c0_13 = arith.constant 0 : index
    %26 = vector.load %arg4[%c0_12, %c0_13] : memref<16x64xf32, #tpu.memory_space<vmem>>, vector<16x64xf32>
    tpu.vector_store %arg4[%c0_12, %c0_13], %25 {strides = array<i32>} : memref<16x64xf32, #tpu.memory_space<vmem>>, vector<16x64xf32>,
    return
  }
  func.func @transform_0(%arg0: i32) -> (i32, i32) {
    %c0_i32 = arith.constant 0 : i32
    %c0_i32_0 = arith.constant 0 : i32
    return %arg0, %c0_i32 : i32, i32
  }
  func.func @transform_1(%arg0: i32) -> (i32, i32) {
    %c0_i32 = arith.constant 0 : i32
    %c0_i32_0 = arith.constant 0 : i32
    %c0_i32_1 = arith.constant 0 : i32
    return %c0_i32, %c0_i32_0 : i32, i32
  }
  func.func @transform_2(%arg0: i32) -> (i32, i32) {
    %c0_i32 = arith.constant 0 : i32
    %c0_i32_0 = arith.constant 0 : i32
    %c0_i32_1 = arith.constant 0 : i32
    return %c0_i32, %c0_i32_0 : i32, i32
  }
  func.func @transform_3(%arg0: i32) -> (i32, i32) {
    %c0_i32 = arith.constant 0 : i32
    %c0_i32_0 = arith.constant 0 : i32
    return %arg0, %c0_i32 : i32, i32
  }
}

</mosaic_0001>

<bundles_post_ra>
// kernel: tpu_custom_call.1
= control target key start
LH: loop header
LB: loop body
LE: loop exit
PB: predicated region body
PF: predicated region fallthrough
CT: control target
= control target key end

     0   :  { %vm115_vm0 = vcmask 523264   ;;  %s1093_s0 = inlined_call_operand.vmem [shape: f32[16,64], index: 0, kind: input, shape index: {}]   ;;  %s1094_s1 = inlined_call_operand.vmem [shape: bf16[64,512], index: 1, kind: input, shape index: {}]   ;;  %s1095_s2 = inlined_call_operand.vmem [shape: bf16[512,64], index: 2, kind: input, shape index: {}]   ;;  %s1096_s3 = inlined_call_operand.hbm [shape: f32[16,64], index: 3, kind: output, shape index: {}]  }
   0x1   :  { %v620_v0 = vld [vmem:[%s1094_s1 + $0x60] sm:$0xf]  ;;  %v780_v1 = vld [vmem:[%s1094_s1 + $0x6c] sm:$0xf0]  ;;  %v778_v2 = vld [vmem:[%s1094_s1 + $0x64] sm:$0xf] }
   0x2   :  { %v621_v3 = vor.u32 %v780_v1, %v620_v0  ;;  %v622_v4 = vld [vmem:[%s1094_s1 + $0x70] sm:$0xf0]  ;;  %v628_v5 = vld [vmem:[%s1094_s1 + $0x68] sm:$0xf]  ;;  %v781_v6 = vld [vmem:[%s1094_s1 + $0x74] sm:$0xf0] }
   0x3   :  { %v625_v7 = vor.u32 %v778_v2, %v622_v4  ;;  %v629_v8 = vor.u32 %v781_v6, %v628_v5  ;;  %v779_v9 = vld [vmem:[%s1094_s1 + $0x6c] sm:$0xf]  ;;  %v630_v10 = vld [vmem:[%s1094_s1 + $0x78] sm:$0xf0]  ;;  %v604_v11 = vld [vmem:[%s1094_s1 + $0x40] sm:$0xf] }
   0x4   :  { %123 = vmatpush.bf16.msra.mxu0 %v621_v3  ;;  %v633_v12 = vor.u32 %v779_v9, %v630_v10  ;;  %v776_v13 = vld [vmem:[%s1094_s1 + $0x4c] sm:$0xf0]  ;;  %v774_v14 = vld [vmem:[%s1094_s1 + $0x44] sm:$0xf]  ;;  %v606_v15 = vld [vmem:[%s1094_s1 + $0x50] sm:$0xf0] }
   0x5   :  { %137 = vmatpush.bf16.msra.mxu1 %v625_v7  ;;  %151 = vmatpush.bf16.msra.mxu2 %v629_v8  ;;  %v605_v16 = vor.u32 %v776_v13, %v604_v11  ;;  %v609_v17 = vor.u32 %v774_v14, %v606_v15  ;;  %v612_v18 = vld [vmem:[%s1094_s1 + $0x48] sm:$0xf]  ;;  %v777_v19 = vld [vmem:[%s1094_s1 + $0x54] sm:$0xf0]  ;;  %v775_v20 = vld [vmem:[%s1094_s1 + $0x4c] sm:$0xf] }
   0x6   :  { %165 = vmatpush.bf16.msra.mxu3 %v633_v12  ;;  %v613_v21 = vor.u32 %v777_v19, %v612_v18  ;;  %v614_v22 = vld [vmem:[%s1094_s1 + $0x58] sm:$0xf0]  ;;  %v588_v23 = vld [vmem:[%s1094_s1 + $0x20] sm:$0xf]  ;;  %v772_v24 = vld [vmem:[%s1094_s1 + $0x2c] sm:$0xf0] }
   0x7   :  { %v617_v25 = vor.u32 %v775_v20, %v614_v22  ;;  %v770_v26 = vld [vmem:[%s1094_s1 + $0x24] sm:$0xf]  ;;  %v590_v27 = vld [vmem:[%s1094_s1 + $0x30] sm:$0xf0]  ;;  %v596_v28 = vld [vmem:[%s1094_s1 + $0x28] sm:$0xf]  ;;  %v589_v29 = vor.u32 %v772_v24, %v588_v23 }
   0x8   :  { %124 = vmatpush.bf16.msra.mxu0 %v605_v16  ;;  %v773_v30 = vld [vmem:[%s1094_s1 + $0x34] sm:$0xf0]  ;;  %v771_v31 = vld [vmem:[%s1094_s1 + $0x2c] sm:$0xf]  ;;  %v598_v32 = vld [vmem:[%s1094_s1 + $0x38] sm:$0xf0]  ;;  %v593_v33 = vor.u32 %v770_v26, %v590_v27 }
   0x9   :  { %138 = vmatpush.bf16.msra.mxu1 %v609_v17  ;;  %152 = vmatpush.bf16.msra.mxu2 %v613_v21  ;;  %v597_v34 = vor.u32 %v773_v30, %v596_v28  ;;  %v572_v35 = vld [vmem:[%s1094_s1] sm:$0xf]  ;;  %v768_v36 = vld [vmem:[%s1094_s1 + $0xc] sm:$0xf0]  ;;  %v766_v37 = vld [vmem:[%s1094_s1 + $0x4] sm:$0xf]  ;;  %v601_v38 = vor.u32 %v771_v31, %v598_v32 }
   0xa   :  { %166 = vmatpush.bf16.msra.mxu3 %v617_v25  ;;  %v574_v39 = vld [vmem:[%s1094_s1 + $0x10] sm:$0xf0]  ;;  %v580_v40 = vld [vmem:[%s1094_s1 + $0x8] sm:$0xf]  ;;  %v769_v41 = vld [vmem:[%s1094_s1 + $0x14] sm:$0xf0]  ;;  %v573_v44 = vor.u32 %v768_v36, %v572_v35 }
   0xb   :  { %v767_v42 = vld [vmem:[%s1094_s1 + $0xc] sm:$0xf]  ;;  %v582_v43 = vld [vmem:[%s1094_s1 + $0x18] sm:$0xf0]  ;;  %v973_v45 = vld [vmem:[%s1093_s0] sm:$0xff]  ;;  %v577_v47 = vor.u32 %v766_v37, %v574_v39  ;;  %v581_v48 = vor.u32 %v769_v41, %v580_v40 }
   0xc   :  { %125 = vmatpush.bf16.msra.mxu0 %v589_v29  ;;  %v978_v46 = vld [vmem:[%s1093_s0 + $0x8] sm:$0xff]  ;;  %v585_v49 = vor.u32 %v767_v42, %v582_v43  ;;  %v789_v50 = vld [vmem:[%s1095_s2 + $0x38] sm:$0xff] }
   0xd   :  { %139 = vmatpush.bf16.msra.mxu1 %v593_v33  ;;  %153 = vmatpush.bf16.msra.mxu2 %v597_v34  ;;  %v18_v51 = vpack.c.bf16 %v978_v46, %v973_v45  ;;  %v797_v52 = vld [vmem:[%s1095_s2 + $0x78] sm:$0xff] }
   0xe   :  { %167 = vmatpush.bf16.msra.mxu3 %v601_v38  ;;  %v805_v53 = vld [vmem:[%s1095_s2 + $0xb8] sm:$0xff] }
  0x10   :  { %126 = vmatpush.bf16.msra.mxu0 %v573_v44 }
  0x11   :  { %140 = vmatpush.bf16.msra.mxu1 %v577_v47  ;;  %154 = vmatpush.bf16.msra.mxu2 %v581_v48 }
  0x12   :  { %8 = vsyncpa [#allocation3], 0  ;;  %168 = vmatpush.bf16.msra.mxu3 %v585_v49  ;;  %v788_v54 = vld [vmem:[%s1095_s2 + $0x30] sm:$0xff]  ;;  %v813_v55 = vld [vmem:[%s1095_s2 + $0xf8] sm:$0xff]  ;;  %s558_s6 = sshll.u32 %s1096_s3, 4  ;;  %s852_s7 = smov 128   ;;  %s559_s6 = int_to_ptr.hbm [resolvable:$true] %s558_s6 }
  0x13   :  { %634 = vmatmul.msk.bf16.vlgmr.msra.gmra.mxu0 %vm115_vm0, %v18_v51  ;;  %v796_v56 = vld [vmem:[%s1095_s2 + $0x70] sm:$0xff]  ;;  %v787_v58 = vld [vmem:[%s1095_s2 + $0x28] sm:$0xff]  ;;  %v786_v62 = vld [vmem:[%s1095_s2 + $0x20] sm:$0xff]  ;;  %s853_s8 = smov 8  }
  0x14   :  { %443 = vmatpush.bf16.msrb.mxu0 %v789_v50  ;;  %635 = vmatmul.msk.bf16.vlgmr.msra.gmra.mxu1 %vm115_vm0, %v18_v51  ;;  %v804_v57 = vld [vmem:[%s1095_s2 + $0xb0] sm:$0xff]  ;;  %v795_v60 = vld [vmem:[%s1095_s2 + $0x68] sm:$0xff]  ;;  %v794_v0 = vld [vmem:[%s1095_s2 + $0x60] sm:$0xff] }
  0x15   :  { %457 = vmatpush.bf16.msrb.mxu1 %v797_v52  ;;  %636 = vmatmul.msk.bf16.vlgmr.msra.gmra.mxu2 %vm115_vm0, %v18_v51  ;;  %v812_v59 = vld [vmem:[%s1095_s2 + $0xf0] sm:$0xff]  ;;  %v803_v61 = vld [vmem:[%s1095_s2 + $0xa8] sm:$0xff]  ;;  %v785_v1 = vld [vmem:[%s1095_s2 + $0x18] sm:$0xff] }
  0x16   :  { %637 = vmatmul.msk.bf16.vlgmr.msra.gmra.mxu3 %vm115_vm0, %v18_v51  ;;  %471 = vmatpush.bf16.msrb.mxu2 %v805_v53  ;;  %v811_v63 = vld [vmem:[%s1095_s2 + $0xe8] sm:$0xff]  ;;  %v793_v2 = vld [vmem:[%s1095_s2 + $0x58] sm:$0xff]  ;;  %v802_v3 = vld [vmem:[%s1095_s2 + $0xa0] sm:$0xff] }
  0x17   :  { %485 = vmatpush.bf16.msrb.mxu3 %v813_v55  ;;  %v810_v4 = vld [vmem:[%s1095_s2 + $0xe0] sm:$0xff]  ;;  %v784_v5 = vld [vmem:[%s1095_s2 + $0x10] sm:$0xff]  ;;  %v801_v7 = vld [vmem:[%s1095_s2 + $0x98] sm:$0xff] }
  0x18   :  { %444 = vmatpush.bf16.msrb.mxu0 %v788_v54  ;;  %v792_v6 = vld [vmem:[%s1095_s2 + $0x50] sm:$0xff]  ;;  %v809_v8 = vld [vmem:[%s1095_s2 + $0xd8] sm:$0xff]  ;;  %v783_v9 = vld [vmem:[%s1095_s2 + $0x8] sm:$0xff] }
  0x19   :  { %458 = vmatpush.bf16.msrb.mxu1 %v796_v56  ;;  %v791_v10 = vld [vmem:[%s1095_s2 + $0x48] sm:$0xff]  ;;  %v800_v11 = vld [vmem:[%s1095_s2 + $0x90] sm:$0xff]  ;;  %v782_v13 = vld [vmem:[%s1095_s2] sm:$0xff] }
  0x1a   :  { %472 = vmatpush.bf16.msrb.mxu2 %v804_v57  ;;  %v808_v12 = vld [vmem:[%s1095_s2 + $0xd0] sm:$0xff]  ;;  %v790_v14 = vld [vmem:[%s1095_s2 + $0x40] sm:$0xff]  ;;  %v799_v15 = vld [vmem:[%s1095_s2 + $0x88] sm:$0xff] }
  0x1b   :  { %486 = vmatpush.bf16.msrb.mxu3 %v812_v59  ;;  %v807_v16 = vld [vmem:[%s1095_s2 + $0xc8] sm:$0xff]  ;;  %v798_v17 = vld [vmem:[%s1095_s2 + $0x80] sm:$0xff] }
  0x1c   :  { %445 = vmatpush.bf16.msrb.mxu0 %v787_v58  ;;  %v806_v18 = vld [vmem:[%s1095_s2 + $0xc0] sm:$0xff]  ;;  %v850_v58 = vmov 64.0   ;;  %s851_s2 = smov [#allocation2]  }
  0x1d   :  { %459 = vmatpush.bf16.msrb.mxu1 %v795_v60  ;;  %818 = vrcp.f32 %v850_v58  ;;  %s556_s30 = sshll.u32 %s851_s2, 4  ;;  %s557_s30 = int_to_ptr.vmem [resolvable:$true] %s556_s30 }
  0x1e   :  { %473 = vmatpush.bf16.msrb.mxu2 %v803_v61 }
  0x1f   :  { %487 = vmatpush.bf16.msrb.mxu3 %v811_v63 }
  0x20   :  { %446 = vmatpush.bf16.msrb.mxu0 %v786_v62 }
  0x21   :  { %460 = vmatpush.bf16.msrb.mxu1 %v794_v0 }
  0x22   :  { %474 = vmatpush.bf16.msrb.mxu2 %v802_v3 }
  0x23   :  { %488 = vmatpush.bf16.msrb.mxu3 %v810_v4  ;;  %v819_v59 = vpop.eup %818 }
  0x24   :  { %447 = vmatpush.bf16.msrb.mxu0 %v785_v1  ;;  %v506_v60 = vmul.f32 64.0, %v819_v59  ;;  %vm510_vm1 = vweird.f32 %v819_v59 }
  0x25   :  { %461 = vmatpush.bf16.msrb.mxu1 %v793_v2 }
  0x26   :  { %475 = vmatpush.bf16.msrb.mxu2 %v801_v7  ;;  %v507_v61 = vsub.f32 1.0, %v506_v60 }
  0x27   :  { %489 = vmatpush.bf16.msrb.mxu3 %v809_v8 }
  0x28   :  { %448 = vmatpush.bf16.msrb.mxu0 %v784_v5  ;;  %v508_v62 = vmul.f32 %v819_v59, %v507_v61 }
  0x29   :  { %462 = vmatpush.bf16.msrb.mxu1 %v792_v6 }
  0x2a   :  { %476 = vmatpush.bf16.msrb.mxu2 %v800_v11 }
  0x2b   :  { %490 = vmatpush.bf16.msrb.mxu3 %v808_v12 }
  0x2c   :  { %449 = vmatpush.bf16.msrb.mxu0 %v783_v9 }
  0x2d   :  { %463 = vmatpush.bf16.msrb.mxu1 %v791_v10 }
  0x2e   :  { %477 = vmatpush.bf16.msrb.mxu2 %v799_v15 }
  0x2f   :  { %491 = vmatpush.bf16.msrb.mxu3 %v807_v16 }
  0x30   :  { %450 = vmatpush.bf16.msrb.mxu0 %v782_v13 }
  0x31   :  { %464 = vmatpush.bf16.msrb.mxu1 %v790_v14 }
  0x32   :  { %478 = vmatpush.bf16.msrb.mxu2 %v798_v17 }
  0x33   :  { %492 = vmatpush.bf16.msrb.mxu3 %v806_v18 }
  0x90   :  { %v128_v19 = vpop.f32.mrf.mxu0 }
  0x91   :  { %v142_v20 = vpop.f32.mrf.mxu1  ;;  %v175_v21 = vmax.f32 %v128_v19, 0.0 }
  0x92   :  { %v176_v23 = vmax.f32 %v142_v20, 0.0 }
  0x98   :  { %v156_v22 = vpop.f32.mrf.mxu2  ;;  %v130_v25 = vpop.f32.mrf.mxu0 }
  0x99   :  { %v170_v24 = vpop.f32.mrf.mxu3  ;;  %v179_v26 = vmax.f32 %v130_v25, 0.0  ;;  %v144_v27 = vpop.f32.mrf.mxu1  ;;  %v177_v32 = vmax.f32 %v156_v22, 0.0 }
  0x9a   :  { %v180_v28 = vmax.f32 %v144_v27, 0.0  ;;  %v178_v35 = vmax.f32 %v170_v24, 0.0 }
  0x9b   :  { %v183_v29 = vpack.c.bf16 %v179_v26, %v175_v21 }
  0x9c   :  { %v184_v30 = vpack.c.bf16 %v180_v28, %v176_v23 }
  0x9d   :  { %451 = vmatmul.bf16.vlgmr.msrb.gmra.mxu0 %v183_v29 }
  0x9e   :  { %465 = vmatmul.bf16.vlgmr.msrb.gmra.mxu1 %v184_v30 }
  0xa0   :  { %v158_v31 = vpop.f32.mrf.mxu2 }
  0xa1   :  { %v181_v33 = vmax.f32 %v158_v31, 0.0  ;;  %v172_v34 = vpop.f32.mrf.mxu3 }
  0xa2   :  { %v182_v36 = vmax.f32 %v172_v34, 0.0 }
  0xa3   :  { %v185_v37 = vpack.c.bf16 %v181_v33, %v177_v32 }
  0xa4   :  { %v186_v38 = vpack.c.bf16 %v182_v36, %v178_v35 }
  0xa5   :  { %479 = vmatmul.bf16.vlgmr.msrb.gmra.mxu2 %v185_v37 }
  0xa6   :  { %493 = vmatmul.bf16.vlgmr.msrb.gmra.mxu3 %v186_v38 }
 0x11a   :  { %v452_v39 = vpop.f32.mrf.mxu0 }
 0x11b   :  { %v453_v40 = vadd.f32 %v452_v39, %v973_v45  ;;  %v466_v41 = vpop.f32.mrf.mxu1 }
 0x11d   :  { %v467_v42 = vadd.f32 %v466_v41, %v453_v40 }
 0x122   :  { %v454_v43 = vpop.f32.mrf.mxu0 }
 0x123   :  { %v455_v49 = vadd.f32 %v454_v43, %v978_v46  ;;  %v468_v52 = vpop.f32.mrf.mxu1  ;;  %v509_v46 = vadd.f32 %v819_v59, %v508_v62 }
 0x125   :  { %v469_v53 = vadd.f32 %v468_v52, %v455_v49  ;;  %v511_v63 = vsel %vm510_vm1, %v819_v59, %v509_v46 }
 0x128   :  { %v480_v44 = vpop.f32.mrf.mxu2 }
 0x129   :  { %v481_v47 = vadd.f32 %v480_v44, %v467_v42  ;;  %v494_v48 = vpop.f32.mrf.mxu3 }
 0x12b   :  { %v495_v50 = vadd.f32 %v494_v48, %v481_v47 }
 0x12d   :  { %v499_v51 = vsel %vm115_vm0, %v495_v50, 0.0 }
 0x12e   :  { %500 = vadd.xlane.f32.xlu0 %v499_v51 }
 0x130   :  { %v482_v54 = vpop.f32.mrf.mxu2 }
 0x131   :  { %v483_v55 = vadd.f32 %v482_v54, %v469_v53  ;;  %v496_v56 = vpop.f32.mrf.mxu3 }
 0x133   :  { %v497_v57 = vadd.f32 %v496_v56, %v483_v55 }
 0x135   :  { %v502_v45 = vsel %vm115_vm0, %v497_v57, 0.0 }
 0x136   :  { %503 = vadd.xlane.f32.xlu0 %v502_v45 }
 0x1a1   :  { %v501_v0 = vpop.xlane.xlu0 %500 }
 0x1a2   :  { %v512_v1 = vmul.f32 %v511_v63, %v501_v0 }
 0x1a4   :  { %v514_v2 = vsub.f32 %v495_v50, %v512_v1 }
 0x1a6   :  { %v516_v3 = vmul.f32 %v514_v2, %v514_v2 }
 0x1a8   :  { %v518_v4 = vsel %vm115_vm0, %v516_v3, 0.0 }
 0x1a9   :  { %519 = vadd.xlane.f32.xlu1 %v518_v4  ;;  %v504_v5 = vpop.xlane.xlu0 %503 }
 0x1aa   :  { %v513_v6 = vmul.f32 %v511_v63, %v504_v5 }
 0x1ac   :  { %v515_v7 = vsub.f32 %v497_v57, %v513_v6 }
 0x1ae   :  { %v517_v8 = vmul.f32 %v515_v7, %v515_v7 }
 0x1b0   :  { %v521_v9 = vsel %vm115_vm0, %v517_v8, 0.0 }
 0x1b1   :  { %522 = vadd.xlane.f32.xlu1 %v521_v9 }
 0x21c   :  { %v520_v10 = vpop.xlane.xlu1 %519 }
 0x21d   :  { %v524_v11 = vmul.f32 %v520_v10, %v511_v63 }
 0x21f   :  { %v526_v12 = vadd.f32 1e-05, %v524_v11 }
 0x221   :  { %820 = vrsqrt.f32 %v526_v12  ;;  %vm534_vm3 = vweird.f32 %v526_v12 }
 0x224   :  { %v523_v13 = vpop.xlane.xlu1 %522 }
 0x225   :  { %v525_v14 = vmul.f32 %v523_v13, %v511_v63 }
 0x227   :  { %v821_v15 = vpop.eup %820  ;;  %v527_v16 = vadd.f32 1e-05, %v525_v14 }
 0x228   :  { %v529_v17 = vmul.f32 %v821_v15, %v526_v12  ;;  %vm535_vm2 = vweird.f32 %v821_v15 }
 0x229   :  { %822 = vrsqrt.f32 %v527_v16  ;;  %vm536_vm4 = vmor %vm534_vm3, %vm535_vm2  ;;  %vm544_vm6 = vweird.f32 %v527_v16 }
 0x22a   :  { %v530_v18 = vmul.f32 %v821_v15, %v529_v17 }
 0x22c   :  { %v531_v19 = vmul.f32 0.5, %v530_v18 }
 0x22e   :  { %v532_v20 = vsub.f32 1.5, %v531_v19 }
 0x22f   :  { %v823_v21 = vpop.eup %822 }
 0x230   :  { %v533_v22 = vmul.f32 %v821_v15, %v532_v20  ;;  %v539_v23 = vmul.f32 %v823_v21, %v527_v16  ;;  %vm545_vm5 = vweird.f32 %v823_v21 }
 0x231   :  { %vm546_vm7 = vmor %vm544_vm6, %vm545_vm5 }
 0x232   :  { %v537_v24 = vsel %vm536_vm4, %v821_v15, %v533_v22  ;;  %v540_v25 = vmul.f32 %v823_v21, %v539_v23 }
 0x233   :  { %v548_v26 = vmul.f32 %v537_v24, %v514_v2 }
 0x234   :  { %v541_v27 = vmul.f32 0.5, %v540_v25 }
 0x235   :  { %550 = vst.msk [vmem:[#allocation2] sm:$0xff] %vm115_vm0, %v548_v26 }
 0x236   :  { %v542_v28 = vsub.f32 1.5, %v541_v27 }
 0x238   :  { %v543_v29 = vmul.f32 %v823_v21, %v542_v28 }
 0x23a   :  { %v547_v30 = vsel %vm546_vm7, %v823_v21, %v543_v29 }
 0x23b   :  { %v549_v31 = vmul.f32 %v547_v30, %v515_v7 }
 0x23d   :  { %551 = vst.msk [vmem:[#allocation2 + $0x8] sm:$0xff] %vm115_vm0, %v549_v31 }
 0x23e   :  { %564 = dma.vmem_to_hbm [thread:$0]  %s557_s30, 256, %s559_s6, [#allocation3], %s852_s7, %s852_s7, %s853_s8  }
 0x23f   :  { %848 = dma.done.wait [#allocation3], 256  }
 0x240   :  { %849 = vsyncadd [#allocation3], 4294967040 }
 0x241   :  { %569 = vsyncpa [#allocation3], 1 }

</bundles_post_ra>
